<compile_context>
chip_gen: v7x
topology: tpu7x:2x2x1
jax: 0.10.0
libtpu: 0.0.40
codegen_flags: <defaults>
</compile_context>

<pallas_src>
import functools

import jax
import jax.numpy as jnp
import numpy as np
from jax.experimental import pallas as pl
from jax.experimental.pallas import tpu as pltpu

_LANE = 128                            # rows per lane-group
_MAX_GROUPS_PER_BLOCK = 1024           # up to 1024 groups * 128 lanes = 131072 rows per grid step
_BLOCK_BYTE_BUDGET = 2 * 1024 * 1024   # cap for the pred block (double-buffered, VMEM-safe v5e+)
_NUM_PARTITIONS = 2                    # leading parallel axis (megacore sharding on v7x)


def _masked_ce_kernel(pred_ref, tgt_ref, loss_ref, cnt_ref):
    """pred_ref: (TB, C, 128) logits; tgt_ref: (TB, 1, 128) int32 class ids (-1 = masked row).
    loss_ref / cnt_ref: (1, 128) lane-wide accumulators, resident across the inner grid axis."""
    i = pl.program_id(1)

    @pl.when(i == 0)
    def _init():
        loss_ref[...] = jnp.zeros_like(loss_ref)
        cnt_ref[...] = jnp.zeros_like(cnt_ref)

    p = pred_ref[...].astype(jnp.float32)              # (TB, C, L)
    t = tgt_ref[...]                                   # (TB, 1, L) int32
    valid = (t >= 0).astype(jnp.float32)               # (TB, 1, L)

    # numerically stable logsumexp over the class (sublane) axis
    pmax = jnp.max(p, axis=1, keepdims=True)                                 # (TB, 1, L)
    lse = pmax + jnp.log(jnp.sum(jnp.exp(p - pmax), axis=1, keepdims=True))  # (TB, 1, L)

    # pred[row, target[row]]: match the class iota against the target id (no match when t == -1)
    cls = jax.lax.broadcasted_iota(jnp.int32, p.shape, 1)                    # (TB, C, L)
    sel = jnp.sum(jnp.where(cls == t, p, 0.0), axis=1, keepdims=True)        # (TB, 1, L)

    per_row = (lse - sel) * valid                                            # (TB, 1, L)

    loss_ref[...] += jnp.sum(per_row, axis=0)                                # (1, L)
    cnt_ref[...] += jnp.sum(valid, axis=0)                                   # (1, L)


def _masked_ce_sums(pred, true):
    """Returns (sum of per-row CE over rows whose one-hot target is non-zero, #such rows)."""
    R, C = pred.shape
    L = _LANE
    NC = _NUM_PARTITIONS

    # per-row class index (cheap wrapper-side argmax over tiny C); -1 marks masked rows
    row_mask = jnp.any(true != 0, axis=-1)
    tgt = jnp.where(row_mask, jnp.argmax(true, axis=-1), -1).astype(jnp.int32)

    groups = -(-R // L)                                   # lane-groups of 128 rows
    bytes_per_group = C * L * max(pred.dtype.itemsize, 4)
    tb = int(max(1, min(_MAX_GROUPS_PER_BLOCK,
                        _BLOCK_BYTE_BUDGET // bytes_per_group,
                        groups)))
    steps = -(-groups // (NC * tb))                       # inner grid steps per partition
    g_pad = steps * NC * tb
    r_pad = g_pad * L

    # lane-dense relayout (one fused pad+transpose pass); padded rows carry target -1
    pred_t = jnp.transpose(
        jnp.pad(pred, ((0, r_pad - R), (0, 0))).reshape(g_pad, L, C), (0, 2, 1))   # (G, C, L)
    tgt_t = jnp.pad(tgt, (0, r_pad - R), constant_values=-1).reshape(g_pad, 1, L)  # (G, 1, L)

    loss_part, cnt_part = pl.pallas_call(
        _masked_ce_kernel,
        out_shape=(
            jax.ShapeDtypeStruct((NC, 1, L), jnp.float32),
            jax.ShapeDtypeStruct((NC, 1, L), jnp.float32),
        ),
        grid_spec=pltpu.PrefetchScalarGridSpec(
            num_scalar_prefetch=0,
            grid=(NC, steps),
            in_specs=[
                pl.BlockSpec((tb, C, L), lambda c, i: (c * steps + i, 0, 0)),
                pl.BlockSpec((tb, 1, L), lambda c, i: (c * steps + i, 0, 0)),
            ],
            out_specs=(
                pl.BlockSpec((None, 1, L), lambda c, i: (c, 0, 0)),
                pl.BlockSpec((None, 1, L), lambda c, i: (c, 0, 0)),
            ),
        ),
        compiler_params=pltpu.CompilerParams(
            dimension_semantics=("parallel", "arbitrary")),
    )(pred_t, tgt_t)

    return jnp.sum(loss_part), jnp.sum(cnt_part)


def train_loss_discrete(masked_pred_X, masked_pred_E, true_X, true_E, node_mask,
                        lambda_train=(1.0, 5.0)):
    """Pallas equivalent of TrainLossDiscrete.forward (node_mask accepted but unused,
    matching the PyTorch module)."""
    del node_mask
    pX = jnp.reshape(masked_pred_X, (-1, masked_pred_X.shape[-1]))
    tX = jnp.reshape(true_X, (-1, true_X.shape[-1]))
    pE = jnp.reshape(masked_pred_E, (-1, masked_pred_E.shape[-1]))
    tE = jnp.reshape(true_E, (-1, true_E.shape[-1]))

    # TODO(synk): the X and E passes could be fused into one pallas_call (pad class dims to
    # max(dx, de)); kept as two calls since per-call overhead is negligible at these block sizes.
    sum_X, cnt_X = _masked_ce_sums(pX, tX)
    sum_E, cnt_E = _masked_ce_sums(pE, tE)

    # 0/0 -> NaN matches torch F.cross_entropy(reduction='mean') on an empty (fully masked) batch.
    loss_X = sum_X / cnt_X
    loss_E = sum_E / cnt_E
    return lambda_train[0] * loss_X + lambda_train[1] * loss_E


def _reference(masked_pred_X, masked_pred_E, true_X, true_E, lambda_train):
    """Pure-JAX reference mirroring the PyTorch semantics (masked mean CE)."""
    def ce(pred, true):
        pred = jnp.reshape(pred, (-1, pred.shape[-1])).astype(jnp.float32)
        true = jnp.reshape(true, (-1, true.shape[-1])).astype(jnp.float32)
        mask = jnp.any(true != 0.0, axis=-1)
        tgt = jnp.argmax(true, axis=-1)
        lse = jax.scipy.special.logsumexp(pred, axis=-1)
        sel = jnp.take_along_axis(pred, tgt[:, None], axis=-1)[:, 0]
        per = lse - sel
        return jnp.sum(per * mask) / jnp.sum(mask)

    return lambda_train[0] * ce(masked_pred_X, true_X) + lambda_train[1] * ce(masked_pred_E, true_E)


if __name__ == "__main__":
    bs, n, dx, de = 2, 8, 5, 4
    lambda_train = (1.0, 5.0)

    key = jax.random.PRNGKey(0)
    k1, k2, k3, k4, k5 = jax.random.split(key, 5)

    # node mask (some nodes inactive)
    node_mask = jax.random.uniform(k1, (bs, n)) > 0.25

    # one-hot targets, zeroed out for masked nodes / edges (like DiGress)
    x_cls = jax.random.randint(k2, (bs, n), 0, dx)
    true_X = jax.nn.one_hot(x_cls, dx) * node_mask[..., None]

    e_cls = jax.random.randint(k3, (bs, n, n), 0, de)
    edge_mask = node_mask[:, :, None] & node_mask[:, None, :]
    true_E = jax.nn.one_hot(e_cls, de) * edge_mask[..., None]

    masked_pred_X = jax.random.normal(k4, (bs, n, dx), dtype=jnp.float32)
    masked_pred_E = jax.random.normal(k5, (bs, n, n, de), dtype=jnp.float32)

    loss_fn = jax.jit(functools.partial(train_loss_discrete, lambda_train=lambda_train))
    out = loss_fn(masked_pred_X, masked_pred_E, true_X, true_E, node_mask)
    out = jax.block_until_ready(out)

    ref = _reference(masked_pred_X, masked_pred_E, true_X, true_E, lambda_train)
    np.testing.assert_allclose(np.asarray(out), np.asarray(ref), rtol=1e-5, atol=1e-5)

    print("KERNEL_OK")
</pallas_src>

<mosaic_0001>
module attributes {stable_mosaic.version = 11 : i64} {
  func.func @_masked_ce_kernel(%arg0: i32, %arg1: i32, %arg2: memref<1x4x128xf32, #tpu.memory_space<vmem>>, %arg3: memref<1x1x128xi32, #tpu.memory_space<vmem>>, %arg4: memref<1x1x128xf32, #tpu.memory_space<vmem>>, %arg5: memref<1x1x128xf32, #tpu.memory_space<vmem>>) attributes {dimension_semantics = [#tpu.dimension_semantics<parallel>, #tpu.dimension_semantics<arbitrary>], iteration_bounds = array<i64: 2, 1>, scalar_prefetch = 0 : i64, scratch_operands = 0 : i64, tpu.core_type = #tpu.core_type<tc>, window_params = [{transform_indices = @transform_0, window_bounds = array<i64: 1, 4, 128>}, {transform_indices = @transform_1, window_bounds = array<i64: 1, 1, 128>}, {transform_indices = @transform_2, window_bounds = array<i64: 1, 1, 128>}, {transform_indices = @transform_3, window_bounds = array<i64: 1, 1, 128>}]} {
    %c0_i32 = arith.constant 0 : i32
    %0 = arith.cmpi eq, %arg1, %c0_i32 : i32
    %1 = arith.extui %0 : i1 to i32
    %c0_i32_0 = arith.constant 0 : i32
    %2 = arith.cmpi ne, %1, %c0_i32_0 : i32
    scf.if %2 {
      %cst_24 = arith.constant 0.000000e+00 : f32
      %41 = vector.broadcast %cst_24 : f32 to vector<1x128xf32>
      %c0_25 = arith.constant 0 : index
      %c0_26 = arith.constant 0 : index
      %c0_27 = arith.constant 0 : index
      %42 = vector.load %arg4[%c0_25, %c0_26, %c0_27] : memref<1x1x128xf32, #tpu.memory_space<vmem>>, vector<1x1x128xf32>
      %43 = vector.shape_cast %42 : vector<1x1x128xf32> to vector<1x128xf32>
      %44 = vector.shape_cast %41 : vector<1x128xf32> to vector<1x1x128xf32>
      tpu.vector_store %arg4[%c0_25, %c0_26, %c0_27], %44 {strides = array<i32>} : memref<1x1x128xf32, #tpu.memory_space<vmem>>, vector<1x1x128xf32>,
      %cst_28 = arith.constant 0.000000e+00 : f32
      %45 = vector.broadcast %cst_28 : f32 to vector<1x128xf32>
      %c0_29 = arith.constant 0 : index
      %c0_30 = arith.constant 0 : index
      %c0_31 = arith.constant 0 : index
      %46 = vector.load %arg5[%c0_29, %c0_30, %c0_31] : memref<1x1x128xf32, #tpu.memory_space<vmem>>, vector<1x1x128xf32>
      %47 = vector.shape_cast %46 : vector<1x1x128xf32> to vector<1x128xf32>
      %48 = vector.shape_cast %45 : vector<1x128xf32> to vector<1x1x128xf32>
      tpu.vector_store %arg5[%c0_29, %c0_30, %c0_31], %48 {strides = array<i32>} : memref<1x1x128xf32, #tpu.memory_space<vmem>>, vector<1x1x128xf32>,
    } else {
    }
    %c0 = arith.constant 0 : index
    %c0_1 = arith.constant 0 : index
    %c0_2 = arith.constant 0 : index
    %3 = vector.load %arg2[%c0, %c0_1, %c0_2] : memref<1x4x128xf32, #tpu.memory_space<vmem>>, vector<1x4x128xf32>
    %c0_3 = arith.constant 0 : index
    %c0_4 = arith.constant 0 : index
    %c0_5 = arith.constant 0 : index
    %4 = vector.load %arg3[%c0_3, %c0_4, %c0_5] : memref<1x1x128xi32, #tpu.memory_space<vmem>>, vector<1x1x128xi32>
    %c0_i32_6 = arith.constant 0 : i32
    %5 = vector.broadcast %c0_i32_6 : i32 to vector<1x1x128xi32>
    %6 = arith.cmpi sge, %4, %5 : vector<1x1x128xi32>
    %7 = arith.extui %6 : vector<1x1x128xi1> to vector<1x1x128xi32>
    %8 = arith.sitofp %7 : vector<1x1x128xi32> to vector<1x1x128xf32>
    %cst = arith.constant dense<0xFF800000> : vector<1x128xf32>
    %9 = vector.multi_reduction <maximumf>, %3, %cst [1] : vector<1x4x128xf32> to vector<1x128xf32>
    %10 = vector.shape_cast %9 : vector<1x128xf32> to vector<1x1x128xf32>
    %11 = vector.broadcast %10 : vector<1x1x128xf32> to vector<1x4x128xf32>
    %12 = arith.subf %3, %11 : vector<1x4x128xf32>
    %13 = math.exp %12 : vector<1x4x128xf32>
    %cst_7 = arith.constant dense<0.000000e+00> : vector<1x128xf32>
    %14 = vector.multi_reduction <add>, %13, %cst_7 [1] : vector<1x4x128xf32> to vector<1x128xf32>
    %15 = vector.shape_cast %14 : vector<1x128xf32> to vector<1x1x128xf32>
    %16 = math.log %15 : vector<1x1x128xf32>
    %17 = arith.addf %10, %16 : vector<1x1x128xf32>
    %18 = tpu.iota {dimensions = array<i32: 1>} : vector<1x4x128xi32>
    %19 = vector.broadcast %4 : vector<1x1x128xi32> to vector<1x4x128xi32>
    %20 = arith.cmpi eq, %18, %19 : vector<1x4x128xi32>
    %cst_8 = arith.constant 0.000000e+00 : f32
    %21 = vector.broadcast %cst_8 : f32 to vector<1x4x128xf32>
    %22 = arith.select %20, %3, %21 : vector<1x4x128xi1>, vector<1x4x128xf32>
    %cst_9 = arith.constant dense<0.000000e+00> : vector<1x128xf32>
    %23 = vector.multi_reduction <add>, %22, %cst_9 [1] : vector<1x4x128xf32> to vector<1x128xf32>
    %24 = vector.shape_cast %23 : vector<1x128xf32> to vector<1x1x128xf32>
    %25 = arith.subf %17, %24 : vector<1x1x128xf32>
    %26 = arith.mulf %25, %8 : vector<1x1x128xf32>
    %c0_10 = arith.constant 0 : index
    %c0_11 = arith.constant 0 : index
    %c0_12 = arith.constant 0 : index
    %27 = vector.load %arg4[%c0_10, %c0_11, %c0_12] : memref<1x1x128xf32, #tpu.memory_space<vmem>>, vector<1x1x128xf32>
    %28 = vector.shape_cast %27 : vector<1x1x128xf32> to vector<1x128xf32>
    %cst_13 = arith.constant dense<0.000000e+00> : vector<1x128xf32>
    %29 = vector.multi_reduction <add>, %26, %cst_13 [0] : vector<1x1x128xf32> to vector<1x128xf32>
    %30 = arith.addf %28, %29 : vector<1x128xf32>
    %c0_14 = arith.constant 0 : index
    %c0_15 = arith.constant 0 : index
    %c0_16 = arith.constant 0 : index
    %31 = vector.load %arg4[%c0_14, %c0_15, %c0_16] : memref<1x1x128xf32, #tpu.memory_space<vmem>>, vector<1x1x128xf32>
    %32 = vector.shape_cast %31 : vector<1x1x128xf32> to vector<1x128xf32>
    %33 = vector.shape_cast %30 : vector<1x128xf32> to vector<1x1x128xf32>
    tpu.vector_store %arg4[%c0_14, %c0_15, %c0_16], %33 {strides = array<i32>} : memref<1x1x128xf32, #tpu.memory_space<vmem>>, vector<1x1x128xf32>,
    %c0_17 = arith.constant 0 : index
    %c0_18 = arith.constant 0 : index
    %c0_19 = arith.constant 0 : index
    %34 = vector.load %arg5[%c0_17, %c0_18, %c0_19] : memref<1x1x128xf32, #tpu.memory_space<vmem>>, vector<1x1x128xf32>
    %35 = vector.shape_cast %34 : vector<1x1x128xf32> to vector<1x128xf32>
    %cst_20 = arith.constant dense<0.000000e+00> : vector<1x128xf32>
    %36 = vector.multi_reduction <add>, %8, %cst_20 [0] : vector<1x1x128xf32> to vector<1x128xf32>
    %37 = arith.addf %35, %36 : vector<1x128xf32>
    %c0_21 = arith.constant 0 : index
    %c0_22 = arith.constant 0 : index
    %c0_23 = arith.constant 0 : index
    %38 = vector.load %arg5[%c0_21, %c0_22, %c0_23] : memref<1x1x128xf32, #tpu.memory_space<vmem>>, vector<1x1x128xf32>
    %39 = vector.shape_cast %38 : vector<1x1x128xf32> to vector<1x128xf32>
    %40 = vector.shape_cast %37 : vector<1x128xf32> to vector<1x1x128xf32>
    tpu.vector_store %arg5[%c0_21, %c0_22, %c0_23], %40 {strides = array<i32>} : memref<1x1x128xf32, #tpu.memory_space<vmem>>, vector<1x1x128xf32>,
    return
  }
  func.func @transform_0(%arg0: i32, %arg1: i32) -> (i32, i32, i32) {
    %c1_i32 = arith.constant 1 : i32
    %0 = arith.muli %arg0, %c1_i32 : i32
    %1 = arith.addi %0, %arg1 : i32
    %c0_i32 = arith.constant 0 : i32
    %c0_i32_0 = arith.constant 0 : i32
    %c0_i32_1 = arith.constant 0 : i32
    return %1, %c0_i32, %c0_i32_0 : i32, i32, i32
  }
  func.func @transform_1(%arg0: i32, %arg1: i32) -> (i32, i32, i32) {
    %c1_i32 = arith.constant 1 : i32
    %0 = arith.muli %arg0, %c1_i32 : i32
    %1 = arith.addi %0, %arg1 : i32
    %c0_i32 = arith.constant 0 : i32
    %c0_i32_0 = arith.constant 0 : i32
    %c0_i32_1 = arith.constant 0 : i32
    return %1, %c0_i32, %c0_i32_0 : i32, i32, i32
  }
  func.func @transform_2(%arg0: i32, %arg1: i32) -> (i32, i32, i32) {
    %c0_i32 = arith.constant 0 : i32
    %c0_i32_0 = arith.constant 0 : i32
    %c0_i32_1 = arith.constant 0 : i32
    return %arg0, %c0_i32, %c0_i32_0 : i32, i32, i32
  }
  func.func @transform_3(%arg0: i32, %arg1: i32) -> (i32, i32, i32) {
    %c0_i32 = arith.constant 0 : i32
    %c0_i32_0 = arith.constant 0 : i32
    %c0_i32_1 = arith.constant 0 : i32
    return %arg0, %c0_i32, %c0_i32_0 : i32, i32, i32
  }
}

module attributes {stable_mosaic.version = 11 : i64} {
  func.func @_masked_ce_kernel(%arg0: i32, %arg1: i32, %arg2: memref<1x5x128xf32, #tpu.memory_space<vmem>>, %arg3: memref<1x1x128xi32, #tpu.memory_space<vmem>>, %arg4: memref<1x1x128xf32, #tpu.memory_space<vmem>>, %arg5: memref<1x1x128xf32, #tpu.memory_space<vmem>>) attributes {dimension_semantics = [#tpu.dimension_semantics<parallel>, #tpu.dimension_semantics<arbitrary>], iteration_bounds = array<i64: 2, 1>, scalar_prefetch = 0 : i64, scratch_operands = 0 : i64, tpu.core_type = #tpu.core_type<tc>, window_params = [{transform_indices = @transform_0, window_bounds = array<i64: 1, 5, 128>}, {transform_indices = @transform_1, window_bounds = array<i64: 1, 1, 128>}, {transform_indices = @transform_2, window_bounds = array<i64: 1, 1, 128>}, {transform_indices = @transform_3, window_bounds = array<i64: 1, 1, 128>}]} {
    %c0_i32 = arith.constant 0 : i32
    %0 = arith.cmpi eq, %arg1, %c0_i32 : i32
    %1 = arith.extui %0 : i1 to i32
    %c0_i32_0 = arith.constant 0 : i32
    %2 = arith.cmpi ne, %1, %c0_i32_0 : i32
    scf.if %2 {
      %cst_24 = arith.constant 0.000000e+00 : f32
      %41 = vector.broadcast %cst_24 : f32 to vector<1x128xf32>
      %c0_25 = arith.constant 0 : index
      %c0_26 = arith.constant 0 : index
      %c0_27 = arith.constant 0 : index
      %42 = vector.load %arg4[%c0_25, %c0_26, %c0_27] : memref<1x1x128xf32, #tpu.memory_space<vmem>>, vector<1x1x128xf32>
      %43 = vector.shape_cast %42 : vector<1x1x128xf32> to vector<1x128xf32>
      %44 = vector.shape_cast %41 : vector<1x128xf32> to vector<1x1x128xf32>
      tpu.vector_store %arg4[%c0_25, %c0_26, %c0_27], %44 {strides = array<i32>} : memref<1x1x128xf32, #tpu.memory_space<vmem>>, vector<1x1x128xf32>,
      %cst_28 = arith.constant 0.000000e+00 : f32
      %45 = vector.broadcast %cst_28 : f32 to vector<1x128xf32>
      %c0_29 = arith.constant 0 : index
      %c0_30 = arith.constant 0 : index
      %c0_31 = arith.constant 0 : index
      %46 = vector.load %arg5[%c0_29, %c0_30, %c0_31] : memref<1x1x128xf32, #tpu.memory_space<vmem>>, vector<1x1x128xf32>
      %47 = vector.shape_cast %46 : vector<1x1x128xf32> to vector<1x128xf32>
      %48 = vector.shape_cast %45 : vector<1x128xf32> to vector<1x1x128xf32>
      tpu.vector_store %arg5[%c0_29, %c0_30, %c0_31], %48 {strides = array<i32>} : memref<1x1x128xf32, #tpu.memory_space<vmem>>, vector<1x1x128xf32>,
    } else {
    }
    %c0 = arith.constant 0 : index
    %c0_1 = arith.constant 0 : index
    %c0_2 = arith.constant 0 : index
    %3 = vector.load %arg2[%c0, %c0_1, %c0_2] : memref<1x5x128xf32, #tpu.memory_space<vmem>>, vector<1x5x128xf32>
    %c0_3 = arith.constant 0 : index
    %c0_4 = arith.constant 0 : index
    %c0_5 = arith.constant 0 : index
    %4 = vector.load %arg3[%c0_3, %c0_4, %c0_5] : memref<1x1x128xi32, #tpu.memory_space<vmem>>, vector<1x1x128xi32>
    %c0_i32_6 = arith.constant 0 : i32
    %5 = vector.broadcast %c0_i32_6 : i32 to vector<1x1x128xi32>
    %6 = arith.cmpi sge, %4, %5 : vector<1x1x128xi32>
    %7 = arith.extui %6 : vector<1x1x128xi1> to vector<1x1x128xi32>
    %8 = arith.sitofp %7 : vector<1x1x128xi32> to vector<1x1x128xf32>
    %cst = arith.constant dense<0xFF800000> : vector<1x128xf32>
    %9 = vector.multi_reduction <maximumf>, %3, %cst [1] : vector<1x5x128xf32> to vector<1x128xf32>
    %10 = vector.shape_cast %9 : vector<1x128xf32> to vector<1x1x128xf32>
    %11 = vector.broadcast %10 : vector<1x1x128xf32> to vector<1x5x128xf32>
    %12 = arith.subf %3, %11 : vector<1x5x128xf32>
    %13 = math.exp %12 : vector<1x5x128xf32>
    %cst_7 = arith.constant dense<0.000000e+00> : vector<1x128xf32>
    %14 = vector.multi_reduction <add>, %13, %cst_7 [1] : vector<1x5x128xf32> to vector<1x128xf32>
    %15 = vector.shape_cast %14 : vector<1x128xf32> to vector<1x1x128xf32>
    %16 = math.log %15 : vector<1x1x128xf32>
    %17 = arith.addf %10, %16 : vector<1x1x128xf32>
    %18 = tpu.iota {dimensions = array<i32: 1>} : vector<1x5x128xi32>
    %19 = vector.broadcast %4 : vector<1x1x128xi32> to vector<1x5x128xi32>
    %20 = arith.cmpi eq, %18, %19 : vector<1x5x128xi32>
    %cst_8 = arith.constant 0.000000e+00 : f32
    %21 = vector.broadcast %cst_8 : f32 to vector<1x5x128xf32>
    %22 = arith.select %20, %3, %21 : vector<1x5x128xi1>, vector<1x5x128xf32>
    %cst_9 = arith.constant dense<0.000000e+00> : vector<1x128xf32>
    %23 = vector.multi_reduction <add>, %22, %cst_9 [1] : vector<1x5x128xf32> to vector<1x128xf32>
    %24 = vector.shape_cast %23 : vector<1x128xf32> to vector<1x1x128xf32>
    %25 = arith.subf %17, %24 : vector<1x1x128xf32>
    %26 = arith.mulf %25, %8 : vector<1x1x128xf32>
    %c0_10 = arith.constant 0 : index
    %c0_11 = arith.constant 0 : index
    %c0_12 = arith.constant 0 : index
    %27 = vector.load %arg4[%c0_10, %c0_11, %c0_12] : memref<1x1x128xf32, #tpu.memory_space<vmem>>, vector<1x1x128xf32>
    %28 = vector.shape_cast %27 : vector<1x1x128xf32> to vector<1x128xf32>
    %cst_13 = arith.constant dense<0.000000e+00> : vector<1x128xf32>
    %29 = vector.multi_reduction <add>, %26, %cst_13 [0] : vector<1x1x128xf32> to vector<1x128xf32>
    %30 = arith.addf %28, %29 : vector<1x128xf32>
    %c0_14 = arith.constant 0 : index
    %c0_15 = arith.constant 0 : index
    %c0_16 = arith.constant 0 : index
    %31 = vector.load %arg4[%c0_14, %c0_15, %c0_16] : memref<1x1x128xf32, #tpu.memory_space<vmem>>, vector<1x1x128xf32>
    %32 = vector.shape_cast %31 : vector<1x1x128xf32> to vector<1x128xf32>
    %33 = vector.shape_cast %30 : vector<1x128xf32> to vector<1x1x128xf32>
    tpu.vector_store %arg4[%c0_14, %c0_15, %c0_16], %33 {strides = array<i32>} : memref<1x1x128xf32, #tpu.memory_space<vmem>>, vector<1x1x128xf32>,
    %c0_17 = arith.constant 0 : index
    %c0_18 = arith.constant 0 : index
    %c0_19 = arith.constant 0 : index
    %34 = vector.load %arg5[%c0_17, %c0_18, %c0_19] : memref<1x1x128xf32, #tpu.memory_space<vmem>>, vector<1x1x128xf32>
    %35 = vector.shape_cast %34 : vector<1x1x128xf32> to vector<1x128xf32>
    %cst_20 = arith.constant dense<0.000000e+00> : vector<1x128xf32>
    %36 = vector.multi_reduction <add>, %8, %cst_20 [0] : vector<1x1x128xf32> to vector<1x128xf32>
    %37 = arith.addf %35, %36 : vector<1x128xf32>
    %c0_21 = arith.constant 0 : index
    %c0_22 = arith.constant 0 : index
    %c0_23 = arith.constant 0 : index
    %38 = vector.load %arg5[%c0_21, %c0_22, %c0_23] : memref<1x1x128xf32, #tpu.memory_space<vmem>>, vector<1x1x128xf32>
    %39 = vector.shape_cast %38 : vector<1x1x128xf32> to vector<1x128xf32>
    %40 = vector.shape_cast %37 : vector<1x128xf32> to vector<1x1x128xf32>
    tpu.vector_store %arg5[%c0_21, %c0_22, %c0_23], %40 {strides = array<i32>} : memref<1x1x128xf32, #tpu.memory_space<vmem>>, vector<1x1x128xf32>,
    return
  }
  func.func @transform_0(%arg0: i32, %arg1: i32) -> (i32, i32, i32) {
    %c1_i32 = arith.constant 1 : i32
    %0 = arith.muli %arg0, %c1_i32 : i32
    %1 = arith.addi %0, %arg1 : i32
    %c0_i32 = arith.constant 0 : i32
    %c0_i32_0 = arith.constant 0 : i32
    %c0_i32_1 = arith.constant 0 : i32
    return %1, %c0_i32, %c0_i32_0 : i32, i32, i32
  }
  func.func @transform_1(%arg0: i32, %arg1: i32) -> (i32, i32, i32) {
    %c1_i32 = arith.constant 1 : i32
    %0 = arith.muli %arg0, %c1_i32 : i32
    %1 = arith.addi %0, %arg1 : i32
    %c0_i32 = arith.constant 0 : i32
    %c0_i32_0 = arith.constant 0 : i32
    %c0_i32_1 = arith.constant 0 : i32
    return %1, %c0_i32, %c0_i32_0 : i32, i32, i32
  }
  func.func @transform_2(%arg0: i32, %arg1: i32) -> (i32, i32, i32) {
    %c0_i32 = arith.constant 0 : i32
    %c0_i32_0 = arith.constant 0 : i32
    %c0_i32_1 = arith.constant 0 : i32
    return %arg0, %c0_i32, %c0_i32_0 : i32, i32, i32
  }
  func.func @transform_3(%arg0: i32, %arg1: i32) -> (i32, i32, i32) {
    %c0_i32 = arith.constant 0 : i32
    %c0_i32_0 = arith.constant 0 : i32
    %c0_i32_1 = arith.constant 0 : i32
    return %arg0, %c0_i32, %c0_i32_0 : i32, i32, i32
  }
}

</mosaic_0001>

<bundles_post_ra>
// kernel: train_loss_discrete.3
= control target key start
LH: loop header
LB: loop body
LE: loop exit
PB: predicated region body
PF: predicated region fallthrough
CT: control target
= control target key end

     0   :  { %s442_s12 = smov 0   ;;  %s444_s13 = smov 0   ;;  %s489_s0 = inlined_call_operand.vmem [shape: f32[2,4,128], index: 0, kind: input, shape index: {}]   ;;  %s490_s1 = inlined_call_operand.vmem [shape: s32[2,1,128], index: 1, kind: input, shape index: {}]   ;;  %s491_s2 = inlined_call_operand.vmem [shape: f32[2,1,128], index: 2, kind: output, shape index: {0}]   ;;  %s492_s3 = inlined_call_operand.vmem [shape: f32[2,1,128], index: 3, kind: output, shape index: {1}]  }
   0x1   :  { %s446_s14 = smov 0  }
   0x2 LB: > { %s26_s15 = sadd.s32 1, %s415_s13  ;;  %p363_p0 = scmp.ge.s32.totalorder %s419_s14, 1  ;;  %s419_s14 = sphi %s446_s14, %s14_s14   ;;  %s415_s13 = sphi %s444_s13, %s494_s13   ;;  %s411_s12 = sphi %s442_s12, %s493_s12  }
   0x3   : > { %p28_p1 = scmp.ge.s32.totalorder %s26_s15, 2  ;;  %p167_p2 = scmp.lt.s32.totalorder %s419_s14, 3 }
   0x5   : > { %s496_s15 = smov (%p28_p1, %s26_s15), 0  ;;  %p168_p3 = pnand %p363_p0, %p167_p2 }
   0x6   : > { %p197_p4 = scmp.lt.s32.totalorder (!%p168_p3), %s411_s12, 1  ;;  %vm224_vm0 = vcmask (!%p168_p3), 1043456   ;;  %v421_v0 = vmov (!%p168_p3), 0.0   ;;  %v245_v9 = vlaneseq (!%p168_p3) }
   0x7   : > { %171 = sbr.rel (%p168_p3) target bundleno = 81 (0x51), region = 28 }
   0x8   : > { %v246_v14 = vshrl.u32 (!%p168_p3), %v245_v9, 7 }
   0xa   : > { %v249_v17 = vsub.s32 (!%p168_p3), 0, %v246_v14 }
   0xe   : > { %s498_s12 = smov (!%p197_p4, %s411_s12), 1 }
   0xf   : > { %s364_s16 = sshll.u32 %s498_s12, 2  ;;  %s466_s22 = scalar_lea.vmem %s491_s2, %s498_s12 }
  0x10   : > { %s200_s19 = scalar_lea.vmem %s489_s0, %s364_s16  ;;  %217 = vst [vmem:[%s466_s22] sm:$0x1] %v421_v0  ;;  %s212_s25 = scalar_lea.vmem %s492_s3, %s498_s12 }
  0x11   : > { %v219_v1 = vld [vmem:[%s200_s19] sm:$0xf]  ;;  %s205_s28 = scalar_lea.vmem %s490_s1, %s498_s12  ;;  %218 = vst [vmem:[%s212_s25] sm:$0x1] %v421_v0 }
  0x12   : > { %v225_v2 = vsel %vm224_vm0, %v219_v1, -inf  ;;  %v220_v4 = vld [vmem:[%s205_s28] sm:$0x1] }
  0x13   : > { %v226_v3 = vrot.slane %v225_v2, 4  ;;  %vm221_vm1 = vcmp.ge.s32.totalorder %v220_v4, 0  ;;  %v250_v18 = vrot.slane %v220_v4, %v249_v17 }
  0x14   : > { %v365_v7 = vsel %vm221_vm1, 1.0, %v421_v0 }
  0x15   : > { %v227_v5 = vmax.f32 %v225_v2, %v226_v3  ;;  %vm251_vm2 = vcmp.eq.s32.totalorder %v246_v14, %v250_v18 }
  0x16   : > { %v252_v19 = vsel %vm251_vm2, %v219_v1, 0.0 }
  0x17   : > { %v228_v6 = vrot.slane %v227_v5, 2  ;;  %v253_v23 = vsel %vm224_vm0, %v252_v19, 0.0  ;;  %v262_v39 = vld [vmem:[%s466_s22] sm:$0x1] }
  0x18   : > { %v266_v10 = vld [vmem:[%s212_s25] sm:$0x1]  ;;  %v254_v25 = vrot.slane %v253_v23, 4 }
  0x19   : > { %v229_v8 = vmax.f32 %v227_v5, %v228_v6  ;;  %v268_v11 = vadd.f32 %v365_v7, %v266_v10 }
  0x1a   : > { %v255_v28 = vadd.f32 %v254_v25, %v253_v23 }
  0x1b   : > { %v230_v12 = vrot.slane %v229_v8, 1  ;;  %269 = vst [vmem:[%s212_s25] sm:$0x1] %v268_v11 }
  0x1c   : > { %v256_v31 = vrot.slane %v255_v28, 2 }
  0x1d   : > { %v231_v13 = vmax.f32 %v229_v8, %v230_v12 }
  0x1e   : > { %v257_v32 = vadd.f32 %v256_v31, %v255_v28 }
  0x1f   : > { %v232_v15 = vsub.f32 %v219_v1, %v231_v13 }
  0x20   : > { %v258_v33 = vrot.slane %v257_v32, 1 }
  0x21   : > { %v233_v16 = vmul.f32 1.442695, %v232_v15 }
  0x22   : > { %v259_v36 = vadd.f32 %v258_v33, %v257_v32 }
  0x23   : > { %393 = vpow2.f32 %v233_v16 }
  0x2d   : > { %v394_v20 = vpop.eup %393 }
  0x2e   : > { %v235_v21 = vsel %vm224_vm0, %v394_v20, 0.0 }
  0x2f   : > { %v236_v22 = vrot.slane %v235_v21, 4 }
  0x31   : > { %v237_v24 = vadd.f32 %v236_v22, %v235_v21 }
  0x33   : > { %v238_v26 = vrot.slane %v237_v24, 2 }
  0x35   : > { %v239_v27 = vadd.f32 %v238_v26, %v237_v24 }
  0x37   : > { %v240_v29 = vrot.slane %v239_v27, 1 }
  0x39   : > { %v241_v30 = vadd.f32 %v240_v29, %v239_v27 }
  0x3b   : > { %395 = vlog2.f32 %v241_v30 }
  0x45   : > { %v396_v34 = vpop.eup %395 }
  0x46   : > { %v243_v35 = vmul.f32 0.6931472, %v396_v34 }
  0x48   : > { %v244_v37 = vadd.f32 %v243_v35, %v231_v13 }
  0x4a   : > { %v260_v38 = vsub.f32 %v244_v37, %v259_v36 }
  0x4c   : > { %v261_v40 = vmul.f32 %v365_v7, %v260_v38 }
  0x4e   : > { %v264_v41 = vadd.f32 %v262_v39, %v261_v40 }
  0x50   : > { %265 = vst [vmem:[%s466_s22] sm:$0x1] %v264_v41 }
  0x51 PF: > { %s14_s14 = sadd.s32 1, %s419_s14   ;;  %s493_s12 = smov %s415_s13 }
  0x52   : > { %p11_p5 = scmp.ge.s32.totalorder %s14_s14, 4   ;;  %s494_s13 = smov %s496_s15 }
  0x54   :  { %13 = sbr.rel (!%p11_p5) target bundleno = 2 (0x2), region = 77 }

// kernel: train_loss_discrete.2
= control target key start
LH: loop header
LB: loop body
LE: loop exit
PB: predicated region body
PF: predicated region fallthrough
CT: control target
= control target key end

     0   :  { %s442_s12 = smov 0   ;;  %s444_s13 = smov 0   ;;  %s489_s0 = inlined_call_operand.vmem [shape: f32[2,5,128], index: 0, kind: input, shape index: {}]   ;;  %s490_s1 = inlined_call_operand.vmem [shape: s32[2,1,128], index: 1, kind: input, shape index: {}]   ;;  %s491_s2 = inlined_call_operand.vmem [shape: f32[2,1,128], index: 2, kind: output, shape index: {0}]   ;;  %s492_s3 = inlined_call_operand.vmem [shape: f32[2,1,128], index: 3, kind: output, shape index: {1}]  }
   0x1   :  { %s446_s14 = smov 0  }
   0x2 LB: > { %s26_s15 = sadd.s32 1, %s415_s13  ;;  %p363_p0 = scmp.ge.s32.totalorder %s419_s14, 1  ;;  %s419_s14 = sphi %s446_s14, %s14_s14   ;;  %s415_s13 = sphi %s444_s13, %s494_s13   ;;  %s411_s12 = sphi %s442_s12, %s493_s12  }
   0x3   : > { %p28_p1 = scmp.ge.s32.totalorder %s26_s15, 2  ;;  %p167_p2 = scmp.lt.s32.totalorder %s419_s14, 3 }
   0x5   : > { %s496_s15 = smov (%p28_p1, %s26_s15), 0  ;;  %p168_p3 = pnand %p363_p0, %p167_p2 }
   0x6   : > { %p197_p4 = scmp.lt.s32.totalorder (!%p168_p3), %s411_s12, 1  ;;  %vm224_vm0 = vcmask (!%p168_p3), 1044480   ;;  %v421_v0 = vmov (!%p168_p3), 0.0   ;;  %v245_v9 = vlaneseq (!%p168_p3) }
   0x7   : > { %171 = sbr.rel (%p168_p3) target bundleno = 81 (0x51), region = 28 }
   0x8   : > { %v246_v14 = vshrl.u32 (!%p168_p3), %v245_v9, 7 }
   0xa   : > { %v249_v17 = vsub.s32 (!%p168_p3), 0, %v246_v14 }
   0xe   : > { %s498_s12 = smov (!%p197_p4, %s411_s12), 1 }
   0xf   : > { %s364_s16 = sshll.u32 %s498_s12, 3  ;;  %s466_s22 = scalar_lea.vmem %s491_s2, %s498_s12 }
  0x10   : > { %s200_s19 = scalar_lea.vmem %s489_s0, %s364_s16  ;;  %217 = vst [vmem:[%s466_s22] sm:$0x1] %v421_v0  ;;  %s212_s25 = scalar_lea.vmem %s492_s3, %s498_s12 }
  0x11   : > { %v219_v1 = vld [vmem:[%s200_s19] sm:$0x1f]  ;;  %s205_s28 = scalar_lea.vmem %s490_s1, %s498_s12  ;;  %218 = vst [vmem:[%s212_s25] sm:$0x1] %v421_v0 }
  0x12   : > { %v225_v2 = vsel %vm224_vm0, %v219_v1, -inf  ;;  %v220_v4 = vld [vmem:[%s205_s28] sm:$0x1] }
  0x13   : > { %v226_v3 = vrot.slane %v225_v2, 4  ;;  %vm221_vm1 = vcmp.ge.s32.totalorder %v220_v4, 0  ;;  %v250_v18 = vrot.slane %v220_v4, %v249_v17 }
  0x14   : > { %v365_v7 = vsel %vm221_vm1, 1.0, %v421_v0 }
  0x15   : > { %v227_v5 = vmax.f32 %v225_v2, %v226_v3  ;;  %vm251_vm2 = vcmp.eq.s32.totalorder %v246_v14, %v250_v18 }
  0x16   : > { %v252_v19 = vsel %vm251_vm2, %v219_v1, 0.0 }
  0x17   : > { %v228_v6 = vrot.slane %v227_v5, 2  ;;  %v253_v23 = vsel %vm224_vm0, %v252_v19, 0.0  ;;  %v262_v39 = vld [vmem:[%s466_s22] sm:$0x1] }
  0x18   : > { %v266_v10 = vld [vmem:[%s212_s25] sm:$0x1]  ;;  %v254_v25 = vrot.slane %v253_v23, 4 }
  0x19   : > { %v229_v8 = vmax.f32 %v227_v5, %v228_v6  ;;  %v268_v11 = vadd.f32 %v365_v7, %v266_v10 }
  0x1a   : > { %v255_v28 = vadd.f32 %v254_v25, %v253_v23 }
  0x1b   : > { %v230_v12 = vrot.slane %v229_v8, 1  ;;  %269 = vst [vmem:[%s212_s25] sm:$0x1] %v268_v11 }
  0x1c   : > { %v256_v31 = vrot.slane %v255_v28, 2 }
  0x1d   : > { %v231_v13 = vmax.f32 %v229_v8, %v230_v12 }
  0x1e   : > { %v257_v32 = vadd.f32 %v256_v31, %v255_v28 }
  0x1f   : > { %v232_v15 = vsub.f32 %v219_v1, %v231_v13 }
  0x20   : > { %v258_v33 = vrot.slane %v257_v32, 1 }
  0x21   : > { %v233_v16 = vmul.f32 1.442695, %v232_v15 }
  0x22   : > { %v259_v36 = vadd.f32 %v258_v33, %v257_v32 }
  0x23   : > { %393 = vpow2.f32 %v233_v16 }
  0x2d   : > { %v394_v20 = vpop.eup %393 }
  0x2e   : > { %v235_v21 = vsel %vm224_vm0, %v394_v20, 0.0 }
  0x2f   : > { %v236_v22 = vrot.slane %v235_v21, 4 }
  0x31   : > { %v237_v24 = vadd.f32 %v236_v22, %v235_v21 }
  0x33   : > { %v238_v26 = vrot.slane %v237_v24, 2 }
  0x35   : > { %v239_v27 = vadd.f32 %v238_v26, %v237_v24 }
  0x37   : > { %v240_v29 = vrot.slane %v239_v27, 1 }
  0x39   : > { %v241_v30 = vadd.f32 %v240_v29, %v239_v27 }
  0x3b   : > { %395 = vlog2.f32 %v241_v30 }
  0x45   : > { %v396_v34 = vpop.eup %395 }
  0x46   : > { %v243_v35 = vmul.f32 0.6931472, %v396_v34 }
  0x48   : > { %v244_v37 = vadd.f32 %v243_v35, %v231_v13 }
  0x4a   : > { %v260_v38 = vsub.f32 %v244_v37, %v259_v36 }
  0x4c   : > { %v261_v40 = vmul.f32 %v365_v7, %v260_v38 }
  0x4e   : > { %v264_v41 = vadd.f32 %v262_v39, %v261_v40 }
  0x50   : > { %265 = vst [vmem:[%s466_s22] sm:$0x1] %v264_v41 }
  0x51 PF: > { %s14_s14 = sadd.s32 1, %s419_s14   ;;  %s493_s12 = smov %s415_s13 }
  0x52   : > { %p11_p5 = scmp.ge.s32.totalorder %s14_s14, 4   ;;  %s494_s13 = smov %s496_s15 }
  0x54   :  { %13 = sbr.rel (!%p11_p5) target bundleno = 2 (0x2), region = 77 }

</bundles_post_ra>
